<compile_context>
chip_gen: v6e
topology: v6e:2x2x1
jax: 0.10.0
libtpu: 0.0.40
codegen_flags: <defaults>
</compile_context>

<pallas_src>
import jax
import jax.numpy as jnp
from jax.experimental import pallas as pl
from jax.experimental.pallas import tpu as pltpu

EPS = 1e-5
_VMEM_LIMIT = 32 * 1024 * 1024  # explicit scoped-VMEM request; safe on v5e/v6e/v7x


def _pick_l_tile(L, C, itemsize, target_bytes=1 << 20):
    """Largest multiple-of-128 divisor of L whose (C, TL) tile is <= target_bytes.

    Keeps at least two L tiles when possible so the HBM stream double-buffers.
    Falls back to TL == L when L is not a multiple of 128 (a full-dim block is
    always legal).
    """
    if L % 128 != 0:
        return L
    cap = max(128, (target_bytes // max(C * itemsize, 1)) // 128 * 128)
    if L % 256 == 0:
        cap = min(cap, L // 2)       # leave >= 2 tiles for DMA/compute overlap
    cap = min(cap, L)
    best = 128
    for t in range(256, cap + 1, 128):
        if L % t == 0:
            best = t
    return best


def _stats_kernel(x_ref, stats_ref):
    """Accumulate per-channel [sum, sum_sq] over the L tiles of one batch row."""
    @pl.when(pl.program_id(1) == 0)
    def _():
        stats_ref[...] = jnp.zeros_like(stats_ref)

    x = x_ref[...].astype(jnp.float32)                # (1, C, TL), L on lanes
    s = jnp.sum(x, axis=2)                            # (1, C)
    ss = jnp.sum(x * x, axis=2)                       # (1, C)
    stats_ref[...] += jnp.concatenate([s, ss], axis=0)[None]   # (1, 2, C)


def _norm_relu_kernel(x_ref, scale_ref, shift_ref, o_ref):
    """y = max(x * scale + shift, 0) with per-channel scale/shift (FMA + max)."""
    x = x_ref[...].astype(jnp.float32)                # (1, C, TL)
    y = x * scale_ref[...] + shift_ref[...]           # (C, 1) broadcasts over lanes
    o_ref[...] = jnp.maximum(y, 0.0).astype(o_ref.dtype)


def batchnorm_relu_pallas(x_ncl, gamma, beta, eps=EPS):
    """Training-mode BatchNorm1d + ReLU over (N, C, L), native layout."""
    N, C, L = x_ncl.shape
    itemsize = jnp.dtype(x_ncl.dtype).itemsize
    TL = _pick_l_tile(L, C, itemsize)
    n_l = L // TL

    # ---- Pass 1: per-batch per-channel partial sums (one read of x). -------
    stats = pl.pallas_call(
        _stats_kernel,
        out_shape=jax.ShapeDtypeStruct((N, 2, C), jnp.float32),
        grid=(N, n_l),
        in_specs=[pl.BlockSpec((1, C, TL), lambda n, l: (n, 0, l))],
        out_specs=pl.BlockSpec((1, 2, C), lambda n, l: (n, 0, 0)),
        compiler_params=pltpu.CompilerParams(
            dimension_semantics=("parallel", "arbitrary"),
            vmem_limit_bytes=_VMEM_LIMIT,
        ),
    )(x_ncl)

    # ---- Tiny combine (O(N*C)) + fold gamma/beta into scale/shift. ---------
    totals = jnp.sum(stats, axis=0)                   # (2, C) in float32
    count = jnp.float32(N * L)
    mean = totals[0] / count
    var = jnp.maximum(totals[1] / count - mean * mean, 0.0)  # biased variance
    inv_std = jax.lax.rsqrt(var + eps)
    g32 = gamma.astype(jnp.float32)
    b32 = beta.astype(jnp.float32)
    scale = (g32 * inv_std).reshape(C, 1)
    shift = (b32 - mean * g32 * inv_std).reshape(C, 1)

    # ---- Pass 2: fully-parallel streamed normalize + ReLU. ------------------
    out = pl.pallas_call(
        _norm_relu_kernel,
        out_shape=jax.ShapeDtypeStruct((N, C, L), x_ncl.dtype),
        grid=(N, n_l),
        in_specs=[
            pl.BlockSpec((1, C, TL), lambda n, l: (n, 0, l)),
            pl.BlockSpec((C, 1), lambda n, l: (0, 0)),   # stays resident in VMEM
            pl.BlockSpec((C, 1), lambda n, l: (0, 0)),
        ],
        out_specs=pl.BlockSpec((1, C, TL), lambda n, l: (n, 0, l)),
        compiler_params=pltpu.CompilerParams(
            dimension_semantics=("parallel", "parallel"),
            vmem_limit_bytes=_VMEM_LIMIT,
        ),
    )(x_ncl, scale, shift)
    return out


def _reference(x_ncl, gamma, beta, eps=EPS):
    # Pure-JAX reference of PyTorch BatchNorm1d (training) + ReLU.
    mean = jnp.mean(x_ncl, axis=(0, 2), keepdims=True)
    var = jnp.mean((x_ncl - mean) ** 2, axis=(0, 2), keepdims=True)
    y = (x_ncl - mean) / jnp.sqrt(var + eps)
    y = y * gamma.reshape(1, -1, 1) + beta.reshape(1, -1, 1)
    return jnp.maximum(y, 0.0)


if __name__ == "__main__":
    # Bottleneck input = wavelet approx/detail coefficients: (B, in_planes, T//2).
    N, C, L = 2, 4, 256
    key = jax.random.PRNGKey(0)
    x = jax.random.normal(key, (N, C, L), dtype=jnp.float32)

    # nn.BatchNorm1d default affine init: weight (gamma) = 1, bias (beta) = 0.
    gamma = jnp.ones((C,), dtype=jnp.float32)
    beta = jnp.zeros((C,), dtype=jnp.float32)

    bn_relu = jax.jit(batchnorm_relu_pallas)
    out = jax.block_until_ready(bn_relu(x, gamma, beta))

    ref = _reference(x, gamma, beta)
    assert out.shape == (N, C, L)
    assert jnp.allclose(out, ref, atol=2e-5, rtol=2e-5), "mismatch vs reference"
    print("KERNEL_OK")
</pallas_src>

<mosaic_0001>
module attributes {stable_mosaic.version = 11 : i64} {
  func.func @_stats_kernel(%arg0: i32, %arg1: i32, %arg2: memref<1x4x128xf32, #tpu.memory_space<vmem>>, %arg3: memref<1x2x4xf32, #tpu.memory_space<vmem>>) attributes {dimension_semantics = [#tpu.dimension_semantics<parallel>, #tpu.dimension_semantics<arbitrary>], iteration_bounds = array<i64: 2, 2>, scalar_prefetch = 0 : i64, scratch_operands = 0 : i64, tpu.core_type = #tpu.core_type<tc>, window_params = [{transform_indices = @transform_0, window_bounds = array<i64: 1, 4, 128>}, {transform_indices = @transform_1, window_bounds = array<i64: 1, 2, 4>}]} {
    %c0_i32 = arith.constant 0 : i32
    %0 = arith.cmpi eq, %arg1, %c0_i32 : i32
    %1 = arith.extui %0 : i1 to i32
    %c0_i32_0 = arith.constant 0 : i32
    %2 = arith.cmpi ne, %1, %c0_i32_0 : i32
    scf.if %2 {
      %cst_10 = arith.constant 0.000000e+00 : f32
      %12 = vector.broadcast %cst_10 : f32 to vector<1x2x4xf32>
      %c0_11 = arith.constant 0 : index
      %c0_12 = arith.constant 0 : index
      %c0_13 = arith.constant 0 : index
      %13 = vector.load %arg3[%c0_11, %c0_12, %c0_13] : memref<1x2x4xf32, #tpu.memory_space<vmem>>, vector<1x2x4xf32>
      tpu.vector_store %arg3[%c0_11, %c0_12, %c0_13], %12 {strides = array<i32>} : memref<1x2x4xf32, #tpu.memory_space<vmem>>, vector<1x2x4xf32>,
    } else {
    }
    %c0 = arith.constant 0 : index
    %c0_1 = arith.constant 0 : index
    %c0_2 = arith.constant 0 : index
    %3 = vector.load %arg2[%c0, %c0_1, %c0_2] : memref<1x4x128xf32, #tpu.memory_space<vmem>>, vector<1x4x128xf32>
    %cst = arith.constant dense<0.000000e+00> : vector<1x4xf32>
    %4 = vector.multi_reduction <add>, %3, %cst [2] : vector<1x4x128xf32> to vector<1x4xf32>
    %5 = arith.mulf %3, %3 : vector<1x4x128xf32>
    %cst_3 = arith.constant dense<0.000000e+00> : vector<1x4xf32>
    %6 = vector.multi_reduction <add>, %5, %cst_3 [2] : vector<1x4x128xf32> to vector<1x4xf32>
    %c0_4 = arith.constant 0 : index
    %c0_5 = arith.constant 0 : index
    %c0_6 = arith.constant 0 : index
    %7 = vector.load %arg3[%c0_4, %c0_5, %c0_6] : memref<1x2x4xf32, #tpu.memory_space<vmem>>, vector<1x2x4xf32>
    %8 = tpu.concatenate %4, %6 in 0 : vector<1x4xf32>, vector<1x4xf32> -> vector<2x4xf32>
    %9 = vector.shape_cast %8 : vector<2x4xf32> to vector<1x2x4xf32>
    %10 = arith.addf %7, %9 : vector<1x2x4xf32>
    %c0_7 = arith.constant 0 : index
    %c0_8 = arith.constant 0 : index
    %c0_9 = arith.constant 0 : index
    %11 = vector.load %arg3[%c0_7, %c0_8, %c0_9] : memref<1x2x4xf32, #tpu.memory_space<vmem>>, vector<1x2x4xf32>
    tpu.vector_store %arg3[%c0_7, %c0_8, %c0_9], %10 {strides = array<i32>} : memref<1x2x4xf32, #tpu.memory_space<vmem>>, vector<1x2x4xf32>,
    return
  }
  func.func @transform_0(%arg0: i32, %arg1: i32) -> (i32, i32, i32) {
    %c0_i32 = arith.constant 0 : i32
    %c0_i32_0 = arith.constant 0 : i32
    return %arg0, %c0_i32, %arg1 : i32, i32, i32
  }
  func.func @transform_1(%arg0: i32, %arg1: i32) -> (i32, i32, i32) {
    %c0_i32 = arith.constant 0 : i32
    %c0_i32_0 = arith.constant 0 : i32
    %c0_i32_1 = arith.constant 0 : i32
    return %arg0, %c0_i32, %c0_i32_0 : i32, i32, i32
  }
}

module attributes {stable_mosaic.version = 11 : i64} {
  func.func @_norm_relu_kernel(%arg0: i32, %arg1: i32, %arg2: memref<1x4x128xf32, #tpu.memory_space<vmem>>, %arg3: memref<4x1xf32, #tpu.memory_space<vmem>>, %arg4: memref<4x1xf32, #tpu.memory_space<vmem>>, %arg5: memref<1x4x128xf32, #tpu.memory_space<vmem>>) attributes {dimension_semantics = [#tpu.dimension_semantics<parallel>, #tpu.dimension_semantics<parallel>], iteration_bounds = array<i64: 2, 2>, scalar_prefetch = 0 : i64, scratch_operands = 0 : i64, tpu.core_type = #tpu.core_type<tc>, window_params = [{transform_indices = @transform_0, window_bounds = array<i64: 1, 4, 128>}, {pipeline_mode = #tpu.pipeline_mode<synchronous>, transform_indices = @transform_1, window_bounds = array<i64: 4, 1>}, {pipeline_mode = #tpu.pipeline_mode<synchronous>, transform_indices = @transform_2, window_bounds = array<i64: 4, 1>}, {transform_indices = @transform_3, window_bounds = array<i64: 1, 4, 128>}]} {
    %c0 = arith.constant 0 : index
    %c0_0 = arith.constant 0 : index
    %c0_1 = arith.constant 0 : index
    %0 = vector.load %arg2[%c0, %c0_0, %c0_1] : memref<1x4x128xf32, #tpu.memory_space<vmem>>, vector<1x4x128xf32>
    %c0_2 = arith.constant 0 : index
    %c0_3 = arith.constant 0 : index
    %1 = vector.load %arg3[%c0_2, %c0_3] : memref<4x1xf32, #tpu.memory_space<vmem>>, vector<4x1xf32>
    %2 = vector.shape_cast %1 : vector<4x1xf32> to vector<1x4x1xf32>
    %3 = vector.broadcast %2 : vector<1x4x1xf32> to vector<1x4x128xf32>
    %4 = arith.mulf %0, %3 : vector<1x4x128xf32>
    %c0_4 = arith.constant 0 : index
    %c0_5 = arith.constant 0 : index
    %5 = vector.load %arg4[%c0_4, %c0_5] : memref<4x1xf32, #tpu.memory_space<vmem>>, vector<4x1xf32>
    %6 = vector.shape_cast %5 : vector<4x1xf32> to vector<1x4x1xf32>
    %7 = vector.broadcast %6 : vector<1x4x1xf32> to vector<1x4x128xf32>
    %8 = arith.addf %4, %7 : vector<1x4x128xf32>
    %cst = arith.constant 0.000000e+00 : f32
    %9 = vector.broadcast %cst : f32 to vector<1x4x128xf32>
    %10 = arith.maximumf %8, %9 : vector<1x4x128xf32>
    %c0_6 = arith.constant 0 : index
    %c0_7 = arith.constant 0 : index
    %c0_8 = arith.constant 0 : index
    %11 = vector.load %arg5[%c0_6, %c0_7, %c0_8] : memref<1x4x128xf32, #tpu.memory_space<vmem>>, vector<1x4x128xf32>
    tpu.vector_store %arg5[%c0_6, %c0_7, %c0_8], %10 {strides = array<i32>} : memref<1x4x128xf32, #tpu.memory_space<vmem>>, vector<1x4x128xf32>,
    return
  }
  func.func @transform_0(%arg0: i32, %arg1: i32) -> (i32, i32, i32) {
    %c0_i32 = arith.constant 0 : i32
    %c0_i32_0 = arith.constant 0 : i32
    return %arg0, %c0_i32, %arg1 : i32, i32, i32
  }
  func.func @transform_1(%arg0: i32, %arg1: i32) -> (i32, i32) {
    %c0_i32 = arith.constant 0 : i32
    %c0_i32_0 = arith.constant 0 : i32
    %c0_i32_1 = arith.constant 0 : i32
    return %c0_i32, %c0_i32_0 : i32, i32
  }
  func.func @transform_2(%arg0: i32, %arg1: i32) -> (i32, i32) {
    %c0_i32 = arith.constant 0 : i32
    %c0_i32_0 = arith.constant 0 : i32
    %c0_i32_1 = arith.constant 0 : i32
    return %c0_i32, %c0_i32_0 : i32, i32
  }
  func.func @transform_3(%arg0: i32, %arg1: i32) -> (i32, i32, i32) {
    %c0_i32 = arith.constant 0 : i32
    %c0_i32_0 = arith.constant 0 : i32
    return %arg0, %c0_i32, %arg1 : i32, i32, i32
  }
}

</mosaic_0001>

<bundles_post_ra>
// kernel: batchnorm_relu_pallas.3
= control target key start
LH: loop header
LB: loop body
LE: loop exit
PB: predicated region body
PF: predicated region fallthrough
CT: control target
= control target key end

     0   :  { %s637_s0 = inlined_call_operand.vmem [shape: f32[2,4,256], index: 0, kind: input, shape index: {}]   ;;  %s638_s1 = inlined_call_operand.vmem [shape: f32[4,1], index: 1, kind: input, shape index: {}]   ;;  %s639_s2 = inlined_call_operand.vmem [shape: f32[4,1], index: 2, kind: input, shape index: {}]   ;;  %s640_s3 = inlined_call_operand.hbm [shape: f32[2,4,256], index: 3, kind: output, shape index: {}]  }
   0x1   :  { %641 = sst [smem:[#allocation5_spill]] %s638_s1 }
   0x2   :  { %8 = vsyncpa [#allocation3], 0 }
   0x3   :  { %10 = vsyncpa [#allocation3 + $0x1], 0  ;;  %s507_s12 = smov 0   ;;  %s509_s13 = smov 0  }
   0x4   :  { %s511_s14 = smov 0   ;;  %s513_s15 = smov 0  }
   0x5   :  { %s515_s16 = smov 0   ;;  %s517_s17 = smov 0  }
   0x6   :  { %s519_s18 = smov 0   ;;  %s521_s19 = smov 0  }
   0x7 LB: > { %s305_s20 = sadd.s32 4294967295, %s483_s19   ;;  %s306_s21 = sadd.s32 4294967294, %s483_s19   ;;  %s483_s19 = sphi %s521_s19, %s16_s19   ;;  %s479_s18 = sphi %s519_s18, %s651_s18   ;;  %s475_s17 = sphi %s517_s17, %s650_s17   ;;  %s471_s16 = sphi %s515_s16, %s649_s16   ;;  %s467_s15 = sphi %s513_s15, %s648_s15   ;;  %s463_s14 = sphi %s511_s14, %s647_s14   ;;  %s459_s13 = sphi %s509_s13, %s646_s13   ;;  %s455_s12 = sphi %s507_s12, %s645_s12  }
   0x8   : > { %s25_s22 = sadd.s32 1, %s475_s17  ;;  %s28_s23 = sadd.s32 1, %s479_s18 }
   0x9   : > { %p26_p0 = scmp.ge.s32.totalorder %s25_s22, 2  ;;  %p117_p1 = scmp.ne.s32.totalorder %s463_s14, %s459_s13 }
   0xa   : > { %p118_p2 = scmp.eq.s32.totalorder %s305_s20, 3  ;;  %p123_p5 = scmp.ne.s32.totalorder %s459_s13, %s455_s12 }
   0xb   : > { %s653_s22 = smov (%p26_p0, %s25_s22), 0  ;;  %s655_s23 = smov (!%p26_p0, %s28_s23), %s479_s18 }
   0xc   : > { %s103_s24 = ssub.s32 %s475_s17, %s653_s22  ;;  %p558_p3 = por %p118_p2, %p117_p1 }
   0xd   : > { %p30_p4 = scmp.ge.s32.totalorder %s655_s23, 2  ;;  %p124_p6 = scmp.eq.s32.totalorder %s306_s21, 3 }
   0xe   : > { %p309_p7 = scmp.ge.s32.totalorder %s483_s19, 1  ;;  %p159_p9 = scmp.lt.s32.totalorder %s483_s19, 5 }
   0xf   : > { %s657_s23 = smov (%p30_p4, %s655_s23), 0  ;;  %p567_p8 = por %p124_p6, %p123_p5 }
  0x10   : > { %s102_s27 = ssub.s32 %s479_s18, %s657_s23  ;;  %s107_s28 = sadd.s32 1, %s463_s14 }
  0x11   : > { %s104_s29 = sor.u32 %s103_s24, %s102_s27  ;;  %p160_p10 = pnand %p309_p7, %p159_p9 }
  0x12   : > { %p105_p11 = scmp.eq.s32.totalorder %s104_s29, 0  ;;  %s644_s1 = sld [smem:[#allocation5_spill]] (!%p160_p10) }
  0x13   : > { %163 = sbr.rel (%p160_p10) target bundleno = 171 (0xab), region = 32  ;;  %p186_p12 = scmp.lt.s32.totalorder (!%p160_p10), %s471_s16, 1 }
  0x14   : > { %s576_s30 = scalar_select %p105_p11, %s463_s14, %s107_s28  }
  0x15   : > { %p188_p13 = scmp.lt.s32.totalorder (!%p160_p10), %s467_s15, 1  ;;  %s183_s21 = sand.u32 (!%p160_p10), 1, %s459_s13  }
  0x16   : > { %s310_s29 = sshll.u32 (!%p160_p10), %s183_s21, 2  ;;  %s314_s4 = sshll.u32 (!%p160_p10), %s471_s16, 1 }
  0x17   : > { %s223_s5 = sadd.s32 (!%p160_p10), %s467_s15, %s314_s4  ;;  %s185_s7 = scalar_lea.vmem (!%p160_p10), [#allocation2], %s310_s29 }
  0x18   : > { %v195_v0 = vld [vmem:[%s644_s1] sm:$0xf]  ;;  %v485_v1 = vmov 0   ;;  %s187_s8 = scalar_select %p186_p12, %s471_s16, 1 }
  0x19   : > { %390 = vset.pattern.permute.xlu0 %v485_v1  ;;  %v202_v2 = vld [vmem:[%s639_s2] sm:$0xf]  ;;  %s189_s9 = scalar_select %p188_p13, %s467_s15, 1 }
  0x1a   : > { %198 = vperm.xlu0 %390, %v195_v0   ;;  %s311_s10 = sshll.u32 %s187_s8, 1  ;;  %s315_s6 = sshll.u32 %s223_s5, 6 }
  0x1b   : > { %s191_s11 = sadd.s32 %s311_s10, %s189_s9  ;;  %s227_s1 = sshll.u32 %s185_s7, 4  ;;  %s228_s1 = int_to_ptr.vmem [resolvable:$true] %s227_s1 }
  0x1c   : > { %s312_s20 = sshll.u32 %s191_s11, 2  ;;  %s225_s10 = scalar_lea.hbm %s640_s3, %s315_s6 }
  0x1d   : > { %s193_s28 = scalar_lea.vmem %s637_s0, %s312_s20  ;;  %s212_s11 = scalar_lea.sflag [#allocation3], %s183_s21 }
  0x1e   : > { %205 = vperm.xlu0 %390, %v202_v2   ;;  %v194_v4 = vld [vmem:[%s193_s28] sm:$0xf]  ;;  %s391_s20 = scalar_lea.vmem %s228_s1, 64  ;;  %s486_s15 = smov [#allocation2]  }
  0x1f   : > { %p392_p0 = scmp.ne.s32.totalorder %s228_s1, %s391_s20  ;;  %s395_s16 = sshll.u32 %s486_s15, 4  ;;  %s396_s16 = int_to_ptr.vmem [resolvable:$false] %s395_s16 }
  0x20   : > { %s397_s24 = scalar_lea.vmem %s396_s16, 128  ;;  %p398_p4 = scmp.lt.s32.totalorder %s228_s1, %s396_s16 }
  0x21   : > { %p393_p1 = pnand %p392_p0, %p558_p3  ;;  %p399_p5 = scmp.lt.s32.totalorder %s397_s24, %s391_s20 }
  0x23   : > { %p394_p2 = pneg %p393_p1  ;;  %p400_p6 = por %p399_p5, %p398_p4 }
  0x25   : > { %p401_p7 = pnand %p400_p6, %p394_p2 }
  0x95   : > { %v199_v3 = vpop.permute.xlu0 %198 }
  0x96   : > { %v201_v5 = vmul.f32 %v199_v3, %v194_v4 }
  0x99   : > { %v206_v6 = vpop.permute.xlu0 %205 }
  0x9a   : > { %v208_v7 = vadd.f32 %v206_v6, %v201_v5 }
  0x9c   : > { %v209_v8 = vmax.f32 %v208_v7, 0.0 }
  0x9e   : > { %210 = vst [vmem:[%s185_s7] sm:$0xf] %v209_v8 }
  0x9f   : > { %404 = shalt.err (!%p401_p7)
}
  0xa0   : > { %s405_s27 = scalar_lea.hbm %s225_s10, 64  ;;  %s409_s29 = scalar_lea.hbm %s640_s3, 256 }
  0xa1   : > { %p406_p9 = scmp.ne.s32.totalorder %s225_s10, %s405_s27  ;;  %p410_p12 = scmp.lt.s32.totalorder %s225_s10, %s640_s3 }
  0xa2   : > { %p411_p13 = scmp.lt.s32.totalorder %s409_s29, %s405_s27 }
  0xa3   : > { %p407_p10 = pnand %p406_p9, %p558_p3 }
  0xa4   : > { %p412_p0 = por %p411_p13, %p410_p12 }
  0xa5   : > { %p408_p11 = pneg %p407_p10 }
  0xa7   : > { %p413_p1 = pnand %p412_p0, %p408_p11 }
  0xa9   : > { %416 = shalt.err (!%p413_p1)
}
  0xaa   : > { %318 = dma.vmem_to_hbm [thread:$0]  (%p558_p3), %s228_s1, 64, %s225_s10, %s212_s11  }
  0xab PF: > { %p324_p2 = scmp.ge.s32.totalorder %s483_s19, 2  ;;  %s239_s6 = sand.u32 1, %s455_s12  }
  0xac   : > { %s240_s7 = scalar_lea.sflag [#allocation3], %s239_s6 }
  0xad   : > { %p321_p4 = pnand %p324_p2, %p567_p8 }
  0xaf   : > { %p322_p5 = pneg %p321_p4 }
  0xb1   : > { %450 = dma.done.wait (%p322_p5), %s240_s7, 64  }
  0xb2   : > { %452 = vsyncadd (%p322_p5), %s240_s7, 4294967232  ;;  %s16_s19 = sadd.s32 1, %s483_s19   ;;  %s645_s12 = smov %s459_s13 }
  0xb3   : > { %p13_p6 = scmp.ge.s32.totalorder %s16_s19, 6   ;;  %s646_s13 = smov %s463_s14 }
  0xb4   : > { %s647_s14 = smov %s576_s30  ;;  %s648_s15 = smov %s475_s17 }
  0xb5   : > { %s649_s16 = smov %s479_s18  ;;  %s650_s17 = smov %s653_s22 }
  0xb6   : > { %s651_s18 = smov %s657_s23  ;;  %15 = sbr.rel (!%p13_p6) target bundleno = 7 (0x7), region = 67 }
  0xbb   :  { %245 = vsyncpa [#allocation3], 1 }
  0xbc   :  { %247 = vsyncpa [#allocation3 + $0x1], 1 }

// kernel: batchnorm_relu_pallas.2
= control target key start
LH: loop header
LB: loop body
LE: loop exit
PB: predicated region body
PF: predicated region fallthrough
CT: control target
= control target key end

     0   :  { %6 = vsyncpa [#allocation3], 0  ;;  %s580_s0 = inlined_call_operand.hbm [shape: f32[2,4,256], index: 0, kind: input, shape index: {}]   ;;  %s581_s1 = inlined_call_operand.vmem [shape: f32[2,2,4], index: 1, kind: output, shape index: {}]  }
   0x1   :  { %8 = vsyncpa [#allocation3 + $0x1], 0  ;;  %s454_s6 = smov 0   ;;  %s456_s7 = smov 0  }
   0x2   :  { %s458_s8 = smov 0   ;;  %s460_s9 = smov 0  }
   0x3   :  { %s462_s10 = smov 0   ;;  %s464_s11 = smov 0  }
   0x4   :  { %s466_s12 = smov 0   ;;  %s468_s13 = smov 0  }
   0x5 LB: > { %s261_s14 = sadd.s32 4294967295, %s440_s13   ;;  %s23_s15 = sadd.s32 1, %s432_s11  ;;  %s440_s13 = sphi %s468_s13, %s14_s13   ;;  %s436_s12 = sphi %s466_s12, %s591_s12   ;;  %s432_s11 = sphi %s464_s11, %s590_s11   ;;  %s428_s10 = sphi %s462_s10, %s589_s10   ;;  %s424_s9 = sphi %s460_s9, %s588_s9   ;;  %s420_s8 = sphi %s458_s8, %s587_s8   ;;  %s416_s7 = sphi %s456_s7, %s586_s7   ;;  %s412_s6 = sphi %s454_s6, %s585_s6  }
   0x6   : > { %p24_p0 = scmp.ge.s32.totalorder %s23_s15, 2  ;;  %s26_s16 = sadd.s32 1, %s436_s12 }
   0x7   : > { %s35_s17 = sadd.s32 1, %s420_s8  ;;  %p42_p1 = scmp.ne.s32.totalorder %s420_s8, %s416_s7 }
   0x8   : > { %s593_s15 = smov (%p24_p0, %s23_s15), 0  ;;  %s595_s16 = smov (!%p24_p0, %s26_s16), %s436_s12 }
   0x9   : > { %s31_s18 = ssub.s32 %s432_s11, %s593_s15  ;;  %p43_p2 = scmp.eq.s32.totalorder %s440_s13, 0 }
   0xa   : > { %p28_p3 = scmp.ge.s32.totalorder %s595_s16, 2  ;;  %p48_p4 = scmp.ne.s32.totalorder %s416_s7, %s412_s6 }
   0xb   : > { %p505_p5 = por %p43_p2, %p42_p1  ;;  %p49_p6 = scmp.eq.s32.totalorder %s261_s14, 0 }
   0xc   : > { %s597_s16 = smov (%p28_p3, %s595_s16), 0  ;;  %p280_p8 = scmp.lt.s32.totalorder %s440_s13, 4 }
   0xd   : > { %p511_p7 = por %p49_p6, %p48_p4  ;;  %s30_s21 = ssub.s32 %s436_s12, %s597_s16 }
   0xe   : > { %s32_s22 = sor.u32 %s31_s18, %s30_s21  ;;  %s98_s23 = sand.u32 1, %s420_s8  }
   0xf   : > { %p33_p9 = scmp.eq.s32.totalorder %s32_s22, 0  ;;  %s265_s24 = sshll.u32 %s98_s23, 2 }
  0x10   : > { %s266_s25 = sshll.u32 %s436_s12, 1  ;;  %s102_s29 = scalar_lea.vmem [#allocation2], %s265_s24 }
  0x11   : > { %s521_s26 = scalar_select %p33_p9, %s420_s8, %s35_s17  }
  0x12   : > { %s107_s27 = sadd.s32 %s432_s11, %s266_s25  ;;  %s111_s30 = sshll.u32 %s102_s29, 4  ;;  %s112_s30 = int_to_ptr.vmem [resolvable:$true] %s111_s30 }
  0x13   : > { %s267_s28 = sshll.u32 %s107_s27, 6  ;;  %p531_p10 = pnand %p280_p8, %p505_p5 }
  0x14   : > { %s109_s4 = scalar_lea.hbm %s580_s0, %s267_s28  ;;  %p268_p11 = scmp.ge.s32.totalorder %s440_s13, 1 }
  0x15   : > { %p116_p12 = scmp.lt.s32.totalorder %s440_s13, 5  ;;  %s99_s6 = scalar_lea.sflag [#allocation3], %s98_s23 }
  0x16   : > { %p348_p13 = pneg %p531_p10  ;;  %s359_s14 = scalar_lea.vmem %s112_s30, 64 }
  0x17   : > { %p360_p0 = scmp.ne.s32.totalorder %s112_s30, %s359_s14  ;;  %s442_s17 = smov [#allocation2]  }
  0x18   : > { %s364_s18 = sshll.u32 %s442_s17, 4  ;;  %s365_s18 = int_to_ptr.vmem [resolvable:$false] %s364_s18 }
  0x19   : > { %p362_p1 = pnand %p360_p0, %p348_p13  ;;  %s366_s21 = scalar_lea.vmem %s365_s18, 128 }
  0x1a   : > { %p367_p3 = scmp.lt.s32.totalorder %s112_s30, %s365_s18  ;;  %p368_p4 = scmp.lt.s32.totalorder %s366_s21, %s359_s14 }
  0x1b   : > { %p363_p2 = pneg %p362_p1 }
  0x1c   : > { %p369_p5 = por %p368_p4, %p367_p3 }
  0x1e   : > { %p370_p6 = pnand %p369_p5, %p363_p2 }
  0x20   : > { %373 = shalt.err (!%p370_p6)
}
  0x21   : > { %279 = dma.hbm_to_vmem [thread:$0]  (!%p531_p10), %s109_s4, 64, %s112_s30, %s99_s6  }
  0x22   : > { %p117_p8 = pnand %p268_p11, %p116_p12 }
  0x23   : > { %s122_s19 = sand.u32 (!%p117_p8), 1, %s416_s7  }
  0x24   : > { %120 = sbr.rel (%p117_p8) target bundleno = 201 (0xc9), region = 24  ;;  %s269_s22 = sshll.u32 (!%p117_p8), %s122_s19, 2 }
  0x25   : > { %s123_s23 = scalar_lea.sflag (!%p117_p8), [#allocation3], %s122_s19  ;;  %s126_s24 = scalar_lea.vmem (!%p117_p8), [#allocation2], %s269_s22 }
  0x29   : > { %407 = dma.done.wait (%p511_p7), %s123_s23, 64  }
  0x2a   : > { %409 = vsyncadd (%p511_p7), %s123_s23, 4294967232  ;;  %p144_p9 = scmp.lt.s32.totalorder %s428_s10, 1  ;;  %p271_p10 = scmp.ne.s32.totalorder %s424_s9, 0 }
  0x2c   : > { %s599_s10 = smov (!%p144_p9, %s428_s10), 1  ;;  %151 = sbr.rel (%p271_p10) target bundleno = 51 (0x33), region = 32 }
  0x2d   : > { %s270_s25 = sshll.u32 %s599_s10, 1 }
  0x2e   : > { %s147_s29 = scalar_lea.vmem %s581_s1, %s270_s25 }
  0x31   : > { %vm152_vm0 = vcmask 25600   ;;  %v443_v0 = vmov 0.0  }
  0x32   : > { %153 = vst.msk [vmem:[%s147_s29] sm:$0x3] %vm152_vm0, %v443_v0 }
  0x33 PF: > { %v154_v1 = vld [vmem:[%s126_s24] sm:$0xf]  ;;  %vm155_vm1 = vcmask 1043456   ;;  %v165_v5 = vlaneseq  ;;  %vm178_vm2 = vcmask 1040384   ;;  %vm181_vm3 = vcmask 25600  }
  0x34   : > { %v156_v2 = vsel %vm155_vm1, %v154_v1, 0.0  ;;  %v159_v3 = vmul.f32 %v154_v1, %v154_v1 }
  0x35   : > { %157 = vadd.xlane.f32.xlu0 %v156_v2  ;;  %v166_v6 = vand.u32 127, %v165_v5  ;;  %v168_v7 = vshrl.u32 %v165_v5, 7 }
  0x36   : > { %v160_v4 = vsel %vm155_vm1, %v159_v3, 0.0 }
  0x37   : > { %v169_v9 = vsub.s32 %v166_v6, %v168_v7 }
  0x39   : > { %161 = vadd.xlane.f32.xlu0 %v160_v4  ;;  %v163_v12 = vld [vmem:[%s147_s29] sm:$0x3] }
  0xbe   : > { %v158_v8 = vpop.xlane.xlu0 %157 }
  0xbf   : > { %v170_v11 = vrot.slane %v158_v8, %v169_v9 }
  0xc2   : > { %v162_v10 = vpop.xlane.xlu0 %161 }
  0xc3   : > { %v176_v13 = vrot.slane %v162_v10, %v169_v9 }
  0xc5   : > { %v179_v14 = vsel %vm178_vm2, %v170_v11, %v176_v13 }
  0xc6   : > { %v180_v15 = vadd.f32 %v179_v14, %v163_v12 }
  0xc8   : > { %182 = vst.msk [vmem:[%s147_s29] sm:$0x3] %vm181_vm3, %v180_v15 }
  0xc9 PF: > { %s14_s13 = sadd.s32 1, %s440_s13   ;;  %s585_s6 = smov %s416_s7 }
  0xca   : > { %p11_p7 = scmp.ge.s32.totalorder %s14_s13, 6   ;;  %s586_s7 = smov %s420_s8 }
  0xcb   : > { %s587_s8 = smov %s521_s26  ;;  %s588_s9 = smov %s432_s11 }
  0xcc   : > { %s589_s10 = smov %s436_s12  ;;  %s590_s11 = smov %s593_s15 }
  0xcd   : > { %s591_s12 = smov %s597_s16  ;;  %13 = sbr.rel (!%p11_p7) target bundleno = 5 (0x5), region = 68 }
  0xd2   :  { %202 = vsyncpa [#allocation3], 1 }
  0xd3   :  { %204 = vsyncpa [#allocation3 + $0x1], 1 }

</bundles_post_ra>
